<compile_context>
chip_gen: v5e
topology: v5e:2x2
jax: 0.10.0
libtpu: 0.0.40
codegen_flags: <defaults>
</compile_context>

<pallas_src>
import math

import jax
import jax.numpy as jnp
from jax.experimental import pallas as pl
from jax.experimental.pallas import tpu as pltpu


def _add_pe_kernel(x_ref, pe_ref, o_ref):
    # x_ref : (1, tile_r, tile_l)
    # pe_ref: (tile_r, 1)  -> broadcasts over the leading batch dim and lanes
    o_ref[...] = x_ref[...] + pe_ref[...]


def make_sinusoidal_pe(d_model: int, max_len: int = 24) -> jnp.ndarray:
    """Matches the PyTorch buffer: pe[t, 0::2] = sin, pe[t, 1::2] = cos."""
    position = jnp.arange(max_len, dtype=jnp.float32)[:, None]            # (L, 1)
    div_term = jnp.exp(
        jnp.arange(0, d_model, 2, dtype=jnp.float32)
        * (-math.log(10000.0) / d_model)
    )                                                                     # (C/2,)
    pe = jnp.zeros((max_len, d_model), dtype=jnp.float32)
    pe = pe.at[:, 0::2].set(jnp.sin(position * div_term))
    pe = pe.at[:, 1::2].set(jnp.cos(position * div_term))
    return pe                                                             # (L, C)


def _vmem_capacity_bytes() -> int:
    # Conservative fallback (v7x-class) if the query is unavailable.
    try:
        return int(pltpu.get_tpu_info().vmem_capacity_bytes)
    except Exception:
        return 64 << 20


def time_positional_encoding(x: jnp.ndarray, pe: jnp.ndarray,
                             *, donate_x: bool = False) -> jnp.ndarray:
    """x: (b, c, f, h, w).  pe: (max_len, c).  Returns same shape/dtype as x."""
    b, c, f, h, w = x.shape
    assert pe.shape[0] >= f and pe.shape[1] == c
    itemsize = jnp.dtype(x.dtype).itemsize
    sub = {4: 8, 2: 16, 1: 32}.get(itemsize, 8)      # sublane packing multiple

    # Generation-aware budgets.
    vmem_cap = _vmem_capacity_bytes()
    if vmem_cap >= (96 << 20):                       # v5e / v6e (128 MiB VMEM)
        target_block_bytes = 8 << 20
        vmem_limit = 64 << 20
    else:                                            # v7x-class (64 MiB VMEM)
        target_block_bytes = 4 << 20
        vmem_limit = 48 << 20

    R = c * f                                        # collapsed (channel, frame) rows
    L = h * w                                        # spatial lanes

    # Tiny (R, 1) pe column in x's dtype; row r = ci*f + fi holds pe[fi, ci].
    # TODO(synk): pe_rows depends only on (f, c, dtype); callers can hoist it
    # out of the per-call path and pass it in directly.
    pe_rows = pe[:f].astype(x.dtype).T.reshape(R, 1)

    x_view = x.reshape(b, R, L)                      # free reshape, no transpose

    # Lane-axis tiling: keep full L when it fits; otherwise 128-multiples.
    max_l_elems = max(128, target_block_bytes // (sub * itemsize))
    if L <= 128 or L <= max_l_elems:
        tile_l = L
    else:
        tile_l = (max_l_elems // 128) * 128

    # Row-axis tiling: fill the block budget, rounded to the sublane multiple.
    tile_r = max(1, target_block_bytes // (tile_l * itemsize))
    if tile_r >= R:
        tile_r = R
    else:
        tile_r = max(sub, (tile_r // sub) * sub)
        tile_r = min(tile_r, R)

    num_r = pl.cdiv(R, tile_r)
    num_l = pl.cdiv(L, tile_l)

    # Ensure >= 2 parallel blocks so both v7x TensorCores get work.
    if b * num_r * num_l < 2:
        if R >= 2 * sub:
            tile_r = max(sub, ((R // 2) // sub) * sub)
            num_r = pl.cdiv(R, tile_r)
        elif L >= 256:
            tile_l = max(128, ((L // 2) // 128) * 128)
            num_l = pl.cdiv(L, tile_l)

    grid = (num_r, b, num_l)                         # rows outermost: pe block
                                                     # index is constant across
                                                     # the inner b / hw axes, so
                                                     # it is DMA'd once per row
                                                     # tile and stays resident.

    x_block = (1, tile_r, tile_l)
    x_idx = lambda ri, bi, li: (bi, ri, li)
    pe_idx = lambda ri, bi, li: (ri, 0)

    out_view = pl.pallas_call(
        _add_pe_kernel,
        out_shape=jax.ShapeDtypeStruct(x_view.shape, x.dtype),
        grid=grid,
        in_specs=[
            pl.BlockSpec(x_block, x_idx),
            pl.BlockSpec((tile_r, 1), pe_idx),
        ],
        out_specs=pl.BlockSpec(x_block, x_idx),
        compiler_params=pltpu.CompilerParams(
            dimension_semantics=("parallel", "parallel", "parallel"),
            vmem_limit_bytes=vmem_limit,
        ),
        input_output_aliases=({0: 0} if donate_x else {}),
    )(x_view, pe_rows)

    # Free reshape back to the native layout; dropout(p=0.0) is the identity.
    return out_view.reshape(b, c, f, h, w)


if __name__ == "__main__":
    key = jax.random.PRNGKey(0)
    b, c, f, h, w = 2, 32, 8, 4, 4          # d_model = c = 32, frames f = 8
    x = jax.random.normal(key, (b, c, f, h, w), dtype=jnp.float32)

    pe = make_sinusoidal_pe(d_model=c, max_len=24)

    out = time_positional_encoding(x, pe)
    out = jax.block_until_ready(out)

    # pure-JAX reference: out[b, c, f, h, w] = x + pe[f, c]
    ref = x + pe[:f].T[None, :, :, None, None]
    assert out.shape == x.shape
    assert jnp.allclose(out, ref, atol=1e-6), "mismatch vs reference"

    print("KERNEL_OK")
</pallas_src>

<mosaic_0001>
module attributes {stable_mosaic.version = 11 : i64} {
  func.func @_add_pe_kernel(%arg0: i32, %arg1: i32, %arg2: i32, %arg3: memref<1x256x16xf32, #tpu.memory_space<vmem>>, %arg4: memref<256x1xf32, #tpu.memory_space<vmem>>, %arg5: memref<1x256x16xf32, #tpu.memory_space<vmem>>) attributes {dimension_semantics = [#tpu.dimension_semantics<parallel>, #tpu.dimension_semantics<parallel>, #tpu.dimension_semantics<parallel>], iteration_bounds = array<i64: 1, 2, 1>, scalar_prefetch = 0 : i64, scratch_operands = 0 : i64, tpu.core_type = #tpu.core_type<tc>, window_params = [{transform_indices = @transform_0, window_bounds = array<i64: 1, 256, 16>}, {transform_indices = @transform_1, window_bounds = array<i64: 256, 1>}, {transform_indices = @transform_2, window_bounds = array<i64: 1, 256, 16>}]} {
    %c0 = arith.constant 0 : index
    %c0_0 = arith.constant 0 : index
    %c0_1 = arith.constant 0 : index
    %0 = vector.load %arg3[%c0, %c0_0, %c0_1] : memref<1x256x16xf32, #tpu.memory_space<vmem>>, vector<1x256x16xf32>
    %c0_2 = arith.constant 0 : index
    %c0_3 = arith.constant 0 : index
    %1 = vector.load %arg4[%c0_2, %c0_3] : memref<256x1xf32, #tpu.memory_space<vmem>>, vector<256x1xf32>
    %2 = vector.shape_cast %1 : vector<256x1xf32> to vector<1x256x1xf32>
    %3 = vector.broadcast %2 : vector<1x256x1xf32> to vector<1x256x16xf32>
    %4 = arith.addf %0, %3 : vector<1x256x16xf32>
    %c0_4 = arith.constant 0 : index
    %c0_5 = arith.constant 0 : index
    %c0_6 = arith.constant 0 : index
    %5 = vector.load %arg5[%c0_4, %c0_5, %c0_6] : memref<1x256x16xf32, #tpu.memory_space<vmem>>, vector<1x256x16xf32>
    tpu.vector_store %arg5[%c0_4, %c0_5, %c0_6], %4 {strides = array<i32>} : memref<1x256x16xf32, #tpu.memory_space<vmem>>, vector<1x256x16xf32>,
    return
  }
  func.func @transform_0(%arg0: i32, %arg1: i32, %arg2: i32) -> (i32, i32, i32) {
    %c0_i32 = arith.constant 0 : i32
    return %arg1, %arg0, %arg2 : i32, i32, i32
  }
  func.func @transform_1(%arg0: i32, %arg1: i32, %arg2: i32) -> (i32, i32) {
    %c0_i32 = arith.constant 0 : i32
    %c0_i32_0 = arith.constant 0 : i32
    return %arg0, %c0_i32 : i32, i32
  }
  func.func @transform_2(%arg0: i32, %arg1: i32, %arg2: i32) -> (i32, i32, i32) {
    %c0_i32 = arith.constant 0 : i32
    return %arg1, %arg0, %arg2 : i32, i32, i32
  }
}

</mosaic_0001>

<bundles_post_ra>
// kernel: tpu_custom_call.1
= control target key start
LH: loop header
LB: loop body
LE: loop exit
PB: predicated region body
PF: predicated region fallthrough
CT: control target
= control target key end

     0   :  { %s720_s9 = smov 0   ;;  %s722_s10 = smov 0   ;;  %s953_s0 = inlined_call_operand.vmem [shape: f32[2,256,16], index: 0, kind: input, shape index: {}]   ;;  %s954_s1 = inlined_call_operand.vmem [shape: f32[256,1], index: 1, kind: input, shape index: {}]   ;;  %s955_s2 = inlined_call_operand.vmem [shape: f32[2,256,16], index: 2, kind: output, shape index: {}]  }
   0x1   :  { %s724_s11 = smov 0  }
   0x2 LB: > { %s27_s12 = sadd.s32 1, %s698_s10  ;;  %p643_p0 = scmp.ge.s32.totalorder %s702_s11, 1  ;;  %s702_s11 = sphi %s724_s11, %s12_s11   ;;  %s698_s10 = sphi %s722_s10, %s957_s10   ;;  %s694_s9 = sphi %s720_s9, %s956_s9  }
   0x3   : > { %p29_p1 = scmp.ge.s32.totalorder %s27_s12, 2  ;;  %p158_p2 = scmp.lt.s32.totalorder %s702_s11, 3 }
   0x5   : > { %s959_s12 = smov (%p29_p1, %s27_s12), 0  ;;  %p159_p3 = pnand %p643_p0, %p158_p2 }
   0x6   : > { %p200_p4 = scmp.lt.s32.totalorder (!%p159_p3), %s694_s9, 1 }
   0x7   : > { %162 = sbr.rel (%p159_p3) target bundleno = 214 (0xd6), region = 28 }
   0xc   : > { %v267_v0 = vld [vmem:[%s954_s1 + $0x20] sm:$0xff]  ;;  %v265_v1 = vld [vmem:[%s954_s1 + $0x10] sm:$0xff]  ;;  %v704_v3 = vmov 0   ;;  %v268_v4 = vld [vmem:[%s954_s1 + $0x28] sm:$0xff]  ;;  %s961_s9 = smov (!%p200_p4, %s694_s9), 1  ;;  %vm487_vm0 = vcmask 130048  }
   0xd   : > { %v263_v2 = vld [vmem:[%s954_s1] sm:$0xff]  ;;  %679 = vset.pattern.permute.xlu2 %v704_v3  ;;  %678 = vset.pattern.permute.xlu1 %v704_v3  ;;  %v266_v5 = vld [vmem:[%s954_s1 + $0x18] sm:$0xff]  ;;  %v264_v6 = vld [vmem:[%s954_s1 + $0x8] sm:$0xff]  ;;  %s650_s29 = sshll.u32 %s961_s9, 8 }
   0xe   : > { %677 = vset.pattern.permute.xlu0 %v704_v3  ;;  %317 = vperm.xlu2 %679, %v267_v0   ;;  %v271_v7 = vld [vmem:[%s954_s1 + $0x40] sm:$0xff]  ;;  %v270_v8 = vld [vmem:[%s954_s1 + $0x38] sm:$0xff]  ;;  %v269_v9 = vld [vmem:[%s954_s1 + $0x30] sm:$0xff]  ;;  %s841_s4 = scalar_lea.vmem %s953_s0, %s650_s29  ;;  %s847_s7 = scalar_lea.vmem %s955_s2, %s650_s29 }
   0xf   : > { %307 = vperm.xlu1 %678, %v265_v1   ;;  %297 = vperm.xlu0 %677, %v263_v2   ;;  %v274_v10 = vld [vmem:[%s954_s1 + $0x58] sm:$0xff]  ;;  %v273_v11 = vld [vmem:[%s954_s1 + $0x50] sm:$0xff]  ;;  %v272_v12 = vld [vmem:[%s954_s1 + $0x48] sm:$0xff] }
  0x10   : > { %v277_v13 = vld [vmem:[%s954_s1 + $0x70] sm:$0xff]  ;;  %v276_v14 = vld [vmem:[%s954_s1 + $0x68] sm:$0xff]  ;;  %v275_v15 = vld [vmem:[%s954_s1 + $0x60] sm:$0xff] }
  0x11   : > { %v280_v16 = vld [vmem:[%s954_s1 + $0x88] sm:$0xff]  ;;  %v279_v17 = vld [vmem:[%s954_s1 + $0x80] sm:$0xff]  ;;  %v278_v18 = vld [vmem:[%s954_s1 + $0x78] sm:$0xff] }
  0x12   : > { %v283_v19 = vld [vmem:[%s954_s1 + $0xa0] sm:$0xff]  ;;  %v282_v20 = vld [vmem:[%s954_s1 + $0x98] sm:$0xff]  ;;  %v281_v21 = vld [vmem:[%s954_s1 + $0x90] sm:$0xff] }
  0x13   : > { %v286_v22 = vld [vmem:[%s954_s1 + $0xb8] sm:$0xff]  ;;  %v285_v23 = vld [vmem:[%s954_s1 + $0xb0] sm:$0xff]  ;;  %v284_v24 = vld [vmem:[%s954_s1 + $0xa8] sm:$0xff] }
  0x14   : > { %v289_v25 = vld [vmem:[%s954_s1 + $0xd0] sm:$0xff]  ;;  %v288_v26 = vld [vmem:[%s954_s1 + $0xc8] sm:$0xff]  ;;  %v287_v27 = vld [vmem:[%s954_s1 + $0xc0] sm:$0xff] }
  0x15   : > { %v292_v28 = vld [vmem:[%s954_s1 + $0xe8] sm:$0xff]  ;;  %v291_v29 = vld [vmem:[%s954_s1 + $0xe0] sm:$0xff]  ;;  %v290_v30 = vld [vmem:[%s954_s1 + $0xd8] sm:$0xff] }
  0x16   : > { %322 = vperm.xlu2 %679, %v268_v4   ;;  %v294_v31 = vld [vmem:[%s954_s1 + $0xf8] sm:$0xff]  ;;  %v293_v32 = vld [vmem:[%s954_s1 + $0xf0] sm:$0xff]  ;;  %v235_v33 = vld [vmem:[%s841_s4 + $0x20] sm:$0xff] }
  0x17   : > { %312 = vperm.xlu1 %678, %v266_v5   ;;  %302 = vperm.xlu0 %677, %v264_v6   ;;  %v236_v36 = vld [vmem:[%s841_s4 + $0x28] sm:$0xff]  ;;  %v239_v39 = vld [vmem:[%s841_s4 + $0x40] sm:$0xff]  ;;  %v242_v42 = vld [vmem:[%s841_s4 + $0x58] sm:$0xff] }
  0x18   : > { %v233_v43 = vld [vmem:[%s841_s4 + $0x10] sm:$0xff]  ;;  %v231_v44 = vld [vmem:[%s841_s4] sm:$0xff]  ;;  %v234_v52 = vld [vmem:[%s841_s4 + $0x18] sm:$0xff] }
  0x19   : > { %v245_v51 = vld [vmem:[%s841_s4 + $0x70] sm:$0xff]  ;;  %v232_v53 = vld [vmem:[%s841_s4 + $0x8] sm:$0xff]  ;;  %v238_v61 = vld [vmem:[%s841_s4 + $0x38] sm:$0xff] }
  0x1a   : > { %v248_v60 = vld [vmem:[%s841_s4 + $0x88] sm:$0xff]  ;;  %v237_v62 = vld [vmem:[%s841_s4 + $0x30] sm:$0xff]  ;;  %v251_v5 = vld [vmem:[%s841_s4 + $0xa0] sm:$0xff] }
  0x1b   : > { %v241_v6 = vld [vmem:[%s841_s4 + $0x50] sm:$0xff] }
  0x1e   : > { %337 = vperm.xlu2 %679, %v271_v7   ;;  %v240_v7 = vld [vmem:[%s841_s4 + $0x48] sm:$0xff] }
  0x1f   : > { %332 = vperm.xlu1 %678, %v270_v8   ;;  %327 = vperm.xlu0 %677, %v269_v9  }
  0x26   : > { %352 = vperm.xlu2 %679, %v274_v10  }
  0x27   : > { %347 = vperm.xlu1 %678, %v273_v11   ;;  %342 = vperm.xlu0 %677, %v272_v12  }
  0x2e   : > { %367 = vperm.xlu2 %679, %v277_v13  }
  0x2f   : > { %362 = vperm.xlu1 %678, %v276_v14   ;;  %357 = vperm.xlu0 %677, %v275_v15   ;;  %v254_v14 = vld [vmem:[%s841_s4 + $0xb8] sm:$0xff]  ;;  %v244_v15 = vld [vmem:[%s841_s4 + $0x68] sm:$0xff] }
  0x36   : > { %382 = vperm.xlu2 %679, %v280_v16   ;;  %v243_v16 = vld [vmem:[%s841_s4 + $0x60] sm:$0xff] }
  0x37   : > { %377 = vperm.xlu1 %678, %v279_v17   ;;  %372 = vperm.xlu0 %677, %v278_v18  }
  0x3e   : > { %397 = vperm.xlu2 %679, %v283_v19  }
  0x3f   : > { %392 = vperm.xlu1 %678, %v282_v20   ;;  %387 = vperm.xlu0 %677, %v281_v21  }
  0x46   : > { %412 = vperm.xlu2 %679, %v286_v22  }
  0x47   : > { %407 = vperm.xlu1 %678, %v285_v23   ;;  %402 = vperm.xlu0 %677, %v284_v24   ;;  %v257_v23 = vld [vmem:[%s841_s4 + $0xd0] sm:$0xff]  ;;  %v247_v24 = vld [vmem:[%s841_s4 + $0x80] sm:$0xff] }
  0x4e   : > { %427 = vperm.xlu2 %679, %v289_v25   ;;  %v246_v25 = vld [vmem:[%s841_s4 + $0x78] sm:$0xff] }
  0x4f   : > { %422 = vperm.xlu1 %678, %v288_v26   ;;  %417 = vperm.xlu0 %677, %v287_v27  }
  0x56   : > { %442 = vperm.xlu2 %679, %v292_v28  }
  0x57   : > { %437 = vperm.xlu1 %678, %v291_v29   ;;  %432 = vperm.xlu0 %677, %v290_v30  }
  0x5f   : > { %452 = vperm.xlu1 %678, %v294_v31   ;;  %447 = vperm.xlu0 %677, %v293_v32   ;;  %v260_v32 = vld [vmem:[%s841_s4 + $0xe8] sm:$0xff] }
  0x68   : > { %v318_v34 = vpop.permute.xlu2 %317 }
  0x69   : > { %v459_v35 = vadd.f32 %v318_v34, %v235_v33  ;;  %v250_v33 = vld [vmem:[%s841_s4 + $0x98] sm:$0xff]  ;;  %v249_v34 = vld [vmem:[%s841_s4 + $0x90] sm:$0xff] }
  0x6b   : > { %492 = vst.msk [vmem:[%s847_s7 + $0x20] sm:$0xff] %vm487_vm0, %v459_v35 }
  0x70   : > { %v323_v37 = vpop.permute.xlu2 %322 }
  0x71   : > { %v460_v38 = vadd.f32 %v323_v37, %v236_v36 }
  0x73   : > { %493 = vst.msk [vmem:[%s847_s7 + $0x28] sm:$0xff] %vm487_vm0, %v460_v38 }
  0x78   : > { %v338_v40 = vpop.permute.xlu2 %337 }
  0x79   : > { %v463_v41 = vadd.f32 %v338_v40, %v239_v39 }
  0x7b   : > { %496 = vst.msk [vmem:[%s847_s7 + $0x40] sm:$0xff] %vm487_vm0, %v463_v41  ;;  %v253_v41 = vld [vmem:[%s841_s4 + $0xb0] sm:$0xff] }
  0x80   : > { %v353_v45 = vpop.permute.xlu2 %352 }
  0x81   : > { %v466_v46 = vadd.f32 %v353_v45, %v242_v42  ;;  %v308_v47 = vpop.permute.xlu1 %307  ;;  %v298_v48 = vpop.permute.xlu0 %297  ;;  %v252_v42 = vld [vmem:[%s841_s4 + $0xa8] sm:$0xff] }
  0x82   : > { %v457_v49 = vadd.f32 %v308_v47, %v233_v43  ;;  %v455_v50 = vadd.f32 %v298_v48, %v231_v44  ;;  %v256_v47 = vld [vmem:[%s841_s4 + $0xc8] sm:$0xff]  ;;  %v255_v48 = vld [vmem:[%s841_s4 + $0xc0] sm:$0xff] }
  0x83   : > { %499 = vst.msk [vmem:[%s847_s7 + $0x58] sm:$0xff] %vm487_vm0, %v466_v46 }
  0x84   : > { %490 = vst.msk [vmem:[%s847_s7 + $0x10] sm:$0xff] %vm487_vm0, %v457_v49 }
  0x85   : > { %488 = vst.msk [vmem:[%s847_s7] sm:$0xff] %vm487_vm0, %v455_v50 }
  0x88   : > { %v368_v54 = vpop.permute.xlu2 %367 }
  0x89   : > { %v469_v55 = vadd.f32 %v368_v54, %v245_v51  ;;  %v313_v56 = vpop.permute.xlu1 %312  ;;  %v303_v57 = vpop.permute.xlu0 %302  ;;  %v258_v54 = vld [vmem:[%s841_s4 + $0xd8] sm:$0xff] }
  0x8a   : > { %v458_v58 = vadd.f32 %v313_v56, %v234_v52  ;;  %v456_v59 = vadd.f32 %v303_v57, %v232_v53  ;;  %v259_v53 = vld [vmem:[%s841_s4 + $0xe0] sm:$0xff] }
  0x8b   : > { %502 = vst.msk [vmem:[%s847_s7 + $0x70] sm:$0xff] %vm487_vm0, %v469_v55 }
  0x8c   : > { %491 = vst.msk [vmem:[%s847_s7 + $0x18] sm:$0xff] %vm487_vm0, %v458_v58 }
  0x8d   : > { %489 = vst.msk [vmem:[%s847_s7 + $0x8] sm:$0xff] %vm487_vm0, %v456_v59  ;;  %v262_v59 = vld [vmem:[%s841_s4 + $0xf8] sm:$0xff] }
  0x90   : > { %v383_v63 = vpop.permute.xlu2 %382 }
  0x91   : > { %v472_v0 = vadd.f32 %v383_v63, %v248_v60  ;;  %v333_v1 = vpop.permute.xlu1 %332  ;;  %v328_v2 = vpop.permute.xlu0 %327  ;;  %v261_v60 = vld [vmem:[%s841_s4 + $0xf0] sm:$0xff] }
  0x92   : > { %v462_v3 = vadd.f32 %v333_v1, %v238_v61  ;;  %v461_v4 = vadd.f32 %v328_v2, %v237_v62 }
  0x93   : > { %505 = vst.msk [vmem:[%s847_s7 + $0x88] sm:$0xff] %vm487_vm0, %v472_v0 }
  0x94   : > { %495 = vst.msk [vmem:[%s847_s7 + $0x38] sm:$0xff] %vm487_vm0, %v462_v3 }
  0x95   : > { %494 = vst.msk [vmem:[%s847_s7 + $0x30] sm:$0xff] %vm487_vm0, %v461_v4 }
  0x98   : > { %v398_v8 = vpop.permute.xlu2 %397 }
  0x99   : > { %v475_v9 = vadd.f32 %v398_v8, %v251_v5  ;;  %v348_v10 = vpop.permute.xlu1 %347  ;;  %v343_v11 = vpop.permute.xlu0 %342 }
  0x9a   : > { %v465_v12 = vadd.f32 %v348_v10, %v241_v6  ;;  %v464_v13 = vadd.f32 %v343_v11, %v240_v7 }
  0x9b   : > { %508 = vst.msk [vmem:[%s847_s7 + $0xa0] sm:$0xff] %vm487_vm0, %v475_v9 }
  0x9c   : > { %498 = vst.msk [vmem:[%s847_s7 + $0x50] sm:$0xff] %vm487_vm0, %v465_v12 }
  0x9d   : > { %497 = vst.msk [vmem:[%s847_s7 + $0x48] sm:$0xff] %vm487_vm0, %v464_v13 }
  0xa0   : > { %v413_v17 = vpop.permute.xlu2 %412 }
  0xa1   : > { %v478_v18 = vadd.f32 %v413_v17, %v254_v14  ;;  %v363_v19 = vpop.permute.xlu1 %362  ;;  %v358_v20 = vpop.permute.xlu0 %357 }
  0xa2   : > { %v468_v21 = vadd.f32 %v363_v19, %v244_v15  ;;  %v467_v22 = vadd.f32 %v358_v20, %v243_v16 }
  0xa3   : > { %511 = vst.msk [vmem:[%s847_s7 + $0xb8] sm:$0xff] %vm487_vm0, %v478_v18 }
  0xa4   : > { %501 = vst.msk [vmem:[%s847_s7 + $0x68] sm:$0xff] %vm487_vm0, %v468_v21 }
  0xa5   : > { %500 = vst.msk [vmem:[%s847_s7 + $0x60] sm:$0xff] %vm487_vm0, %v467_v22 }
  0xa8   : > { %v428_v26 = vpop.permute.xlu2 %427 }
  0xa9   : > { %v481_v27 = vadd.f32 %v428_v26, %v257_v23  ;;  %v378_v28 = vpop.permute.xlu1 %377  ;;  %v373_v29 = vpop.permute.xlu0 %372 }
  0xaa   : > { %v471_v30 = vadd.f32 %v378_v28, %v247_v24  ;;  %v470_v31 = vadd.f32 %v373_v29, %v246_v25 }
  0xab   : > { %514 = vst.msk [vmem:[%s847_s7 + $0xd0] sm:$0xff] %vm487_vm0, %v481_v27 }
  0xac   : > { %504 = vst.msk [vmem:[%s847_s7 + $0x80] sm:$0xff] %vm487_vm0, %v471_v30 }
  0xad   : > { %503 = vst.msk [vmem:[%s847_s7 + $0x78] sm:$0xff] %vm487_vm0, %v470_v31 }
  0xb0   : > { %v443_v35 = vpop.permute.xlu2 %442 }
  0xb1   : > { %v484_v36 = vadd.f32 %v443_v35, %v260_v32  ;;  %v393_v37 = vpop.permute.xlu1 %392  ;;  %v388_v38 = vpop.permute.xlu0 %387 }
  0xb2   : > { %v474_v39 = vadd.f32 %v393_v37, %v250_v33  ;;  %v473_v40 = vadd.f32 %v388_v38, %v249_v34 }
  0xb3   : > { %517 = vst.msk [vmem:[%s847_s7 + $0xe8] sm:$0xff] %vm487_vm0, %v484_v36 }
  0xb4   : > { %507 = vst.msk [vmem:[%s847_s7 + $0x98] sm:$0xff] %vm487_vm0, %v474_v39 }
  0xb5   : > { %506 = vst.msk [vmem:[%s847_s7 + $0x90] sm:$0xff] %vm487_vm0, %v473_v40 }
  0xb9   : > { %v408_v43 = vpop.permute.xlu1 %407  ;;  %v403_v44 = vpop.permute.xlu0 %402 }
  0xba   : > { %v477_v45 = vadd.f32 %v408_v43, %v253_v41  ;;  %v476_v46 = vadd.f32 %v403_v44, %v252_v42 }
  0xbc   : > { %510 = vst.msk [vmem:[%s847_s7 + $0xb0] sm:$0xff] %vm487_vm0, %v477_v45 }
  0xbd   : > { %509 = vst.msk [vmem:[%s847_s7 + $0xa8] sm:$0xff] %vm487_vm0, %v476_v46 }
  0xc1   : > { %v423_v49 = vpop.permute.xlu1 %422  ;;  %v418_v50 = vpop.permute.xlu0 %417 }
  0xc2   : > { %v480_v51 = vadd.f32 %v423_v49, %v256_v47  ;;  %v479_v52 = vadd.f32 %v418_v50, %v255_v48 }
  0xc4   : > { %513 = vst.msk [vmem:[%s847_s7 + $0xc8] sm:$0xff] %vm487_vm0, %v480_v51 }
  0xc5   : > { %512 = vst.msk [vmem:[%s847_s7 + $0xc0] sm:$0xff] %vm487_vm0, %v479_v52 }
  0xc9   : > { %v438_v55 = vpop.permute.xlu1 %437  ;;  %v433_v56 = vpop.permute.xlu0 %432 }
  0xca   : > { %v483_v57 = vadd.f32 %v438_v55, %v259_v53  ;;  %v482_v58 = vadd.f32 %v433_v56, %v258_v54 }
  0xcc   : > { %516 = vst.msk [vmem:[%s847_s7 + $0xe0] sm:$0xff] %vm487_vm0, %v483_v57 }
  0xcd   : > { %515 = vst.msk [vmem:[%s847_s7 + $0xd8] sm:$0xff] %vm487_vm0, %v482_v58 }
  0xd1   : > { %v453_v61 = vpop.permute.xlu1 %452  ;;  %v448_v62 = vpop.permute.xlu0 %447 }
  0xd2   : > { %v486_v63 = vadd.f32 %v453_v61, %v262_v59  ;;  %v485_v0 = vadd.f32 %v448_v62, %v261_v60 }
  0xd4   : > { %519 = vst.msk [vmem:[%s847_s7 + $0xf8] sm:$0xff] %vm487_vm0, %v486_v63 }
  0xd5   : > { %518 = vst.msk [vmem:[%s847_s7 + $0xf0] sm:$0xff] %vm487_vm0, %v485_v0 }
  0xd6 PF: > { %s12_s11 = sadd.s32 1, %s702_s11   ;;  %s956_s9 = smov %s698_s10 }
  0xd7   : > { %p9_p5 = scmp.ge.s32.totalorder %s12_s11, 4   ;;  %s957_s10 = smov %s959_s12 }
  0xd9   :  { %11 = sbr.rel (!%p9_p5) target bundleno = 2 (0x2), region = 61 }

</bundles_post_ra>
